<compile_context>
chip_gen: v7x
topology: tpu7x:2x2x1
jax: 0.10.0
libtpu: 0.0.40
codegen_flags: <defaults>
</compile_context>

<pallas_src>
import jax
import jax.numpy as jnp
from jax.experimental import pallas as pl
from jax.experimental.pallas import tpu as pltpu

LANE = 128


def policy_kernel(x_ref, w1_ref, b1_ref, w2_ref, b2_ref, mean_ref):
    # fc1: (TB, S) @ (S, H) on the MXU, bf16 operands, f32 accumulate.
    x = x_ref[...]
    h = jnp.dot(x.astype(jnp.bfloat16), w1_ref[...].astype(jnp.bfloat16),
                preferred_element_type=jnp.float32)
    # Bias + ReLU kept in f32 (v5e VPU has no bf16 datapath).
    h = jnp.maximum(h + b1_ref[...], 0.0)
    # fc2_mean: (TB, H) @ (H, A_pad). A_pad is a multiple of 128 so the final
    # store is an unmasked, lane-dense vst.
    mean = jnp.dot(h.astype(jnp.bfloat16), w2_ref[...].astype(jnp.bfloat16),
                   preferred_element_type=jnp.float32) + b2_ref[...]
    mean_ref[...] = mean.astype(mean_ref.dtype)


def policy_forward(x, w1_t, b1, w2_t, b2, variance, *, block_b=512):
    """x: (B, state_space) f32; w1_t: (state_space, hidden); w2_t: (hidden, action_space).

    Returns (action_mean (B, A), scale (B, A)) — the parameters of
    Normal(action_mean, sqrt(variance)).
    """
    B, S = x.shape
    H = w1_t.shape[1]
    A = w2_t.shape[1]

    # --- lane-dense output: pad action dim to a multiple of 128 ------------
    A_pad = max(LANE, -(-A // LANE) * LANE)
    w2_pad = jnp.zeros((H, A_pad), w2_t.dtype).at[:, :A].set(w2_t)
    b2_pad = jnp.zeros((1, A_pad), b2.dtype).at[:, :A].set(b2)

    # --- batch tiling: multiple of 8 sublanes, capped for v7x VMEM ---------
    tb = min(block_b, -(-B // 8) * 8)
    tb = max(8, (tb // 8) * 8)
    B_pad = -(-B // tb) * tb
    x_pad = jnp.pad(x, ((0, B_pad - B), (0, 0))) if B_pad != B else x
    grid = (B_pad // tb,)

    cost = pl.CostEstimate(
        flops=2 * B_pad * (S * H + H * A_pad),
        transcendentals=0,
        bytes_accessed=4 * (B_pad * S + S * H + H + H * A_pad + A_pad
                            + B_pad * A_pad),
    )

    mean_pad = pl.pallas_call(
        policy_kernel,
        out_shape=jax.ShapeDtypeStruct((B_pad, A_pad), jnp.float32),
        grid=grid,
        in_specs=[
            pl.BlockSpec((tb, S), lambda i: (i, 0)),        # x tile (pipelined)
            pl.BlockSpec((S, H), lambda i: (0, 0)),          # w1 resident
            pl.BlockSpec((1, H), lambda i: (0, 0)),          # b1 resident
            pl.BlockSpec((H, A_pad), lambda i: (0, 0)),      # w2 resident (padded)
            pl.BlockSpec((1, A_pad), lambda i: (0, 0)),      # b2 resident (padded)
        ],
        out_specs=pl.BlockSpec((tb, A_pad), lambda i: (i, 0)),
        compiler_params=pltpu.CompilerParams(
            dimension_semantics=("parallel",)),
        cost_estimate=cost,
    )(x_pad, w1_t, b1, w2_pad, b2_pad)

    mean = mean_pad[:B, :A]
    # Normal(mean, sqrt(variance)): scale is one scalar; broadcast in wrapper
    # instead of materializing / DMA-ing a full array from the kernel.
    # NOTE: variance <= 0 would produce NaN here, matching torch.sqrt behavior.
    scale = jnp.broadcast_to(jnp.sqrt(variance[0]), mean.shape)
    return mean, scale


def init_policy_params(key, state_space, action_space, hidden=64):
    """Mirror Policy.init_weights(): normal_ weights, zero biases, sigma=100."""
    k1, k2 = jax.random.split(key)
    # torch Linear stores (out, in); we keep the transposed (in, out) layout.
    w1_t = jax.random.normal(k1, (state_space, hidden), dtype=jnp.float32)
    b1 = jnp.zeros((1, hidden), dtype=jnp.float32)
    w2_t = jax.random.normal(k2, (hidden, action_space), dtype=jnp.float32)
    b2 = jnp.zeros((1, action_space), dtype=jnp.float32)
    sigma = jnp.array([100.0], dtype=jnp.float32)  # nn.Parameter (unused in fwd)
    return w1_t, b1, w2_t, b2, sigma


if __name__ == "__main__":
    state_space = 8
    action_space = 2
    batch = 8

    key = jax.random.PRNGKey(0)
    kx, kp = jax.random.split(key)

    x = jax.random.normal(kx, (batch, state_space), dtype=jnp.float32)
    w1_t, b1, w2_t, b2, _sigma = init_policy_params(kp, state_space, action_space)

    # The forward pass takes an externally supplied `variance` tensor.
    variance = jnp.array([0.25], dtype=jnp.float32)

    mean, scale = policy_forward(x, w1_t, b1, w2_t, b2, variance)
    jax.block_until_ready((mean, scale))

    # Cross-check against a plain-JAX reference using the same bf16 MXU path
    # (bf16 operands, f32 accumulate) so the comparison is apples-to-apples.
    ref_h = jnp.maximum(
        jnp.dot(x.astype(jnp.bfloat16), w1_t.astype(jnp.bfloat16),
                preferred_element_type=jnp.float32) + b1, 0.0)
    ref_mean = jnp.dot(ref_h.astype(jnp.bfloat16), w2_t.astype(jnp.bfloat16),
                       preferred_element_type=jnp.float32) + b2
    ref_scale = jnp.full_like(ref_mean, jnp.sqrt(variance[0]))
    assert jnp.allclose(mean, ref_mean, atol=1e-3, rtol=1e-3), "mean mismatch"
    assert jnp.allclose(scale, ref_scale, atol=1e-6), "scale mismatch"

    print("KERNEL_OK")
</pallas_src>

<mosaic_0001>
module attributes {stable_mosaic.version = 11 : i64} {
  func.func @policy_kernel(%arg0: i32, %arg1: memref<8x8xf32, #tpu.memory_space<vmem>>, %arg2: memref<8x64xf32, #tpu.memory_space<vmem>>, %arg3: memref<1x64xf32, #tpu.memory_space<vmem>>, %arg4: memref<64x128xf32, #tpu.memory_space<vmem>>, %arg5: memref<1x128xf32, #tpu.memory_space<vmem>>, %arg6: memref<8x128xf32, #tpu.memory_space<vmem>>) attributes {dimension_semantics = [#tpu.dimension_semantics<parallel>], iteration_bounds = array<i64: 1>, scalar_prefetch = 0 : i64, scratch_operands = 0 : i64, tpu.core_type = #tpu.core_type<tc>, window_params = [{transform_indices = @transform_0, window_bounds = array<i64: 8, 8>}, {pipeline_mode = #tpu.pipeline_mode<synchronous>, transform_indices = @transform_1, window_bounds = array<i64: 8, 64>}, {pipeline_mode = #tpu.pipeline_mode<synchronous>, transform_indices = @transform_2, window_bounds = array<i64: 1, 64>}, {pipeline_mode = #tpu.pipeline_mode<synchronous>, transform_indices = @transform_3, window_bounds = array<i64: 64, 128>}, {pipeline_mode = #tpu.pipeline_mode<synchronous>, transform_indices = @transform_4, window_bounds = array<i64: 1, 128>}, {transform_indices = @transform_5, window_bounds = array<i64: 8, 128>}]} {
    %c0 = arith.constant 0 : index
    %c0_0 = arith.constant 0 : index
    %0 = vector.load %arg1[%c0, %c0_0] : memref<8x8xf32, #tpu.memory_space<vmem>>, vector<8x8xf32>
    %1 = arith.truncf %0 : vector<8x8xf32> to vector<8x8xbf16>
    %c0_1 = arith.constant 0 : index
    %c0_2 = arith.constant 0 : index
    %2 = vector.load %arg2[%c0_1, %c0_2] : memref<8x64xf32, #tpu.memory_space<vmem>>, vector<8x64xf32>
    %3 = arith.truncf %2 : vector<8x64xf32> to vector<8x64xbf16>
    %cst = arith.constant dense<0.000000e+00> : vector<8x64xf32>
    %4 = tpu.matmul %1, %3, %cst {dimension_numbers = #tpu.dot_dimension_numbers<[1], [0], [0], [1], [0, 0, 1, 1], [], []>} : vector<8x8xbf16>, vector<8x64xbf16>, vector<8x64xf32> -> vector<8x64xf32>
    %c0_3 = arith.constant 0 : index
    %c0_4 = arith.constant 0 : index
    %5 = vector.load %arg3[%c0_3, %c0_4] : memref<1x64xf32, #tpu.memory_space<vmem>>, vector<1x64xf32>
    %6 = vector.broadcast %5 : vector<1x64xf32> to vector<8x64xf32>
    %7 = arith.addf %4, %6 : vector<8x64xf32>
    %cst_5 = arith.constant 0.000000e+00 : f32
    %8 = vector.broadcast %cst_5 : f32 to vector<8x64xf32>
    %9 = arith.maximumf %7, %8 : vector<8x64xf32>
    %10 = arith.truncf %9 : vector<8x64xf32> to vector<8x64xbf16>
    %c0_6 = arith.constant 0 : index
    %c0_7 = arith.constant 0 : index
    %11 = vector.load %arg4[%c0_6, %c0_7] : memref<64x128xf32, #tpu.memory_space<vmem>>, vector<64x128xf32>
    %12 = arith.truncf %11 : vector<64x128xf32> to vector<64x128xbf16>
    %cst_8 = arith.constant dense<0.000000e+00> : vector<8x128xf32>
    %13 = tpu.matmul %10, %12, %cst_8 {dimension_numbers = #tpu.dot_dimension_numbers<[1], [0], [0], [1], [0, 0, 1, 1], [], []>} : vector<8x64xbf16>, vector<64x128xbf16>, vector<8x128xf32> -> vector<8x128xf32>
    %c0_9 = arith.constant 0 : index
    %c0_10 = arith.constant 0 : index
    %14 = vector.load %arg5[%c0_9, %c0_10] : memref<1x128xf32, #tpu.memory_space<vmem>>, vector<1x128xf32>
    %15 = vector.broadcast %14 : vector<1x128xf32> to vector<8x128xf32>
    %16 = arith.addf %13, %15 : vector<8x128xf32>
    %c0_11 = arith.constant 0 : index
    %c0_12 = arith.constant 0 : index
    %17 = vector.load %arg6[%c0_11, %c0_12] : memref<8x128xf32, #tpu.memory_space<vmem>>, vector<8x128xf32>
    tpu.vector_store %arg6[%c0_11, %c0_12], %16 {strides = array<i32>} : memref<8x128xf32, #tpu.memory_space<vmem>>, vector<8x128xf32>,
    return
  }
  func.func @transform_0(%arg0: i32) -> (i32, i32) {
    %c0_i32 = arith.constant 0 : i32
    %c0_i32_0 = arith.constant 0 : i32
    return %arg0, %c0_i32 : i32, i32
  }
  func.func @transform_1(%arg0: i32) -> (i32, i32) {
    %c0_i32 = arith.constant 0 : i32
    %c0_i32_0 = arith.constant 0 : i32
    %c0_i32_1 = arith.constant 0 : i32
    return %c0_i32, %c0_i32_0 : i32, i32
  }
  func.func @transform_2(%arg0: i32) -> (i32, i32) {
    %c0_i32 = arith.constant 0 : i32
    %c0_i32_0 = arith.constant 0 : i32
    %c0_i32_1 = arith.constant 0 : i32
    return %c0_i32, %c0_i32_0 : i32, i32
  }
  func.func @transform_3(%arg0: i32) -> (i32, i32) {
    %c0_i32 = arith.constant 0 : i32
    %c0_i32_0 = arith.constant 0 : i32
    %c0_i32_1 = arith.constant 0 : i32
    return %c0_i32, %c0_i32_0 : i32, i32
  }
  func.func @transform_4(%arg0: i32) -> (i32, i32) {
    %c0_i32 = arith.constant 0 : i32
    %c0_i32_0 = arith.constant 0 : i32
    %c0_i32_1 = arith.constant 0 : i32
    return %c0_i32, %c0_i32_0 : i32, i32
  }
  func.func @transform_5(%arg0: i32) -> (i32, i32) {
    %c0_i32 = arith.constant 0 : i32
    %c0_i32_0 = arith.constant 0 : i32
    return %arg0, %c0_i32 : i32, i32
  }
}

</mosaic_0001>

<bundles_post_ra>
// kernel: tpu_custom_call.1
= control target key start
LH: loop header
LB: loop body
LE: loop exit
PB: predicated region body
PF: predicated region fallthrough
CT: control target
= control target key end

     0   :  { %10 = vsyncpa [#allocation3], 0  ;;  %s423_s0 = inlined_call_operand.hbm [shape: f32[8,8], index: 0, kind: input, shape index: {}]   ;;  %s424_s1 = inlined_call_operand.hbm [shape: f32[8,64], index: 1, kind: input, shape index: {}]   ;;  %s425_s2 = inlined_call_operand.vmem [shape: f32[1,64], index: 2, kind: input, shape index: {}]   ;;  %s426_s3 = inlined_call_operand.hbm [shape: f32[64,128], index: 3, kind: input, shape index: {}]   ;;  %s427_s4 = inlined_call_operand.vmem [shape: f32[1,128], index: 4, kind: input, shape index: {}]   ;;  %s428_s5 = inlined_call_operand.hbm [shape: f32[8,128], index: 5, kind: output, shape index: {}]  }
   0x1   :  { %11 = vsyncpa [#allocation6], 0 }
   0x2   :  { %12 = vsyncpa [#allocation4], 0  ;;  %s331_s18 = smov [#allocation5]   ;;  %s332_s20 = smov [#allocation2]  }
   0x3   :  { %s29_s19 = sshll.u32 %s331_s18, 4  ;;  %s19_s21 = sshll.u32 %s332_s20, 4  ;;  %s30_s19 = int_to_ptr.vmem [resolvable:$true] %s29_s19  ;;  %s20_s21 = int_to_ptr.vmem [resolvable:$true] %s19_s21 }
   0x4   :  { %s237_s24 = scalar_lea.hbm %s424_s1, 128 }
   0x5   :  { %p238_p0 = scmp.ne.s32.totalorder %s424_s1, %s237_s24  ;;  %p241_p1 = scmp.lt.u32.totalorder %s237_s24, %s424_s1 }
   0x7   :  { %p243_p2 = pnand %p241_p1, %p238_p0 }
   0x9   :  { %246 = shalt.err (!%p243_p2)
}
   0xa   :  { %s247_s29 = scalar_lea.vmem %s30_s19, 128  ;;  %p252_p4 = scmp.lt.s32.totalorder %s30_s19, %s30_s19 }
   0xb   :  { %p248_p3 = scmp.ne.s32.totalorder %s30_s19, %s247_s29  ;;  %p253_p5 = scmp.lt.s32.totalorder %s247_s29, %s247_s29 }
   0xd   :  { %p254_p6 = por %p253_p5, %p252_p4 }
   0xf   :  { %p255_p7 = pnand %p254_p6, %p248_p3 }
  0x11   :  { %258 = shalt.err (!%p255_p7)
}
  0x12   :  { %32 = dma.hbm_to_vmem [thread:$0]  %s424_s1, 128, %s30_s19, [#allocation6]  }
  0x13   :  { %s259_s9 = scalar_lea.hbm %s423_s0, 128 }
  0x14   :  { %p260_p8 = scmp.ne.s32.totalorder %s423_s0, %s259_s9  ;;  %p263_p9 = scmp.lt.u32.totalorder %s259_s9, %s423_s0 }
  0x16   :  { %p265_p10 = pnand %p263_p9, %p260_p8 }
  0x18   :  { %268 = shalt.err (!%p265_p10)
}
  0x19   :  { %s269_s14 = scalar_lea.vmem %s20_s21, 128  ;;  %p274_p12 = scmp.lt.s32.totalorder %s20_s21, %s20_s21 }
  0x1a   :  { %p270_p11 = scmp.ne.s32.totalorder %s20_s21, %s269_s14  ;;  %p275_p13 = scmp.lt.s32.totalorder %s269_s14, %s269_s14 }
  0x1c   :  { %p276_p0 = por %p275_p13, %p274_p12 }
  0x1e   :  { %p277_p1 = pnand %p276_p0, %p270_p11 }
  0x20   :  { %280 = shalt.err (!%p277_p1)
}
  0x21   :  { %22 = dma.hbm_to_vmem [thread:$0]  %s423_s0, 128, %s20_s21, [#allocation3]  }
  0x22   :  { %s333_s16 = smov [#allocation7]   ;;  %s281_s20 = scalar_lea.hbm %s426_s3, 1024 }
  0x23   :  { %s40_s17 = sshll.u32 %s333_s16, 4  ;;  %p282_p2 = scmp.ne.s32.totalorder %s426_s3, %s281_s20  ;;  %s41_s17 = int_to_ptr.vmem [resolvable:$true] %s40_s17 }
  0x24   :  { %p285_p3 = scmp.lt.u32.totalorder %s281_s20, %s426_s3 }
  0x26   :  { %p287_p4 = pnand %p285_p3, %p282_p2 }
  0x28   :  { %290 = shalt.err (!%p287_p4)
}
  0x29   :  { %s291_s26 = scalar_lea.vmem %s41_s17, 1024  ;;  %p296_p6 = scmp.lt.s32.totalorder %s41_s17, %s41_s17 }
  0x2a   :  { %p292_p5 = scmp.ne.s32.totalorder %s41_s17, %s291_s26  ;;  %p297_p7 = scmp.lt.s32.totalorder %s291_s26, %s291_s26 }
  0x2c   :  { %p298_p8 = por %p297_p7, %p296_p6 }
  0x2e   :  { %p299_p9 = pnand %p298_p8, %p292_p5 }
  0x30   :  { %302 = shalt.err (!%p299_p9)
}
  0x31   :  { %s334_s0 = smov 128   ;;  %s335_s21 = smov 8  }
  0x32   :  { %46 = dma.hbm_to_vmem [thread:$0]  %s426_s3, 1024, %s41_s17, [#allocation6], %s334_s0, %s334_s0, %s335_s21  }
  0x33   :  { %325 = dma.done.wait [#allocation3], 128  }
  0x34   :  { %326 = vsyncadd [#allocation3], 4294967168 }
  0x35   :  { %327 = dma.done.wait [#allocation6], 1152  }
  0x36   :  { %328 = vsyncadd [#allocation6], 4294966144  ;;  %v336_v0 = vmov 0.0   ;;  %vm337_vm0 = vmmov 0   ;;  %v61_v1 = vld [vmem:[#allocation5] sm:$0xff]  ;;  %vm74_vm1 = vcmask 1043456  }
  0x37   :  { %211 = vmatprep.subr.bf16.mxu0 %v336_v0  ;;  %213 = vmatprep.mubr.msk.bf16.mxu0 %vm337_vm0, %v336_v0  ;;  %v59_v2 = vld [vmem:[#allocation2] sm:$0xff]  ;;  %v120_v3 = vld [vmem:[#allocation7] sm:$0xff]  ;;  %v62_v4 = vpack.c.bf16 %v61_v1, %v61_v1  ;;  %v121_v5 = vld [vmem:[#allocation7 + $0x8] sm:$0xff]  ;;  %vm70_vm2 = vcmask 64512   ;;  %vm139_vm3 = vcmask 523264   ;;  %s338_s7 = smov [#allocation8]  }
  0x38   :  { %217 = vmatprep.subr.bf16.mxu1 %v336_v0  ;;  %225 = vmatprep.mubr.msk.bf16.mxu1 %vm337_vm0, %v336_v0  ;;  %v122_v6 = vld [vmem:[#allocation7 + $0x10] sm:$0xff]  ;;  %v123_v7 = vld [vmem:[#allocation7 + $0x18] sm:$0xff]  ;;  %v128_v8 = vpack.c.bf16 %v121_v5, %v120_v3  ;;  %v60_v10 = vpack.c.bf16 %v59_v2, %v59_v2  ;;  %v124_v12 = vld [vmem:[#allocation7 + $0x20] sm:$0xff]  ;;  %s190_s8 = sshll.u32 %s338_s7, 4  ;;  %s191_s8 = int_to_ptr.vmem [resolvable:$true] %s190_s8 }
  0x39   :  { %v76_v9 = vsel %vm74_vm1, %v62_v4, 0  ;;  %v129_v11 = vpack.c.bf16 %v123_v7, %v122_v6  ;;  %v125_v13 = vld [vmem:[#allocation7 + $0x28] sm:$0xff]  ;;  %v126_v15 = vld [vmem:[#allocation7 + $0x30] sm:$0xff]  ;;  %v127_v16 = vld [vmem:[#allocation7 + $0x38] sm:$0xff]  ;;  %p308_p11 = scmp.lt.s32.totalorder %s191_s8, %s191_s8 }
  0x3a   :  { %212 = vmatpush3.bf16.msra.mxu0 %v76_v9  ;;  %218 = vmatpush3.bf16.msra.mxu1 %v128_v8  ;;  %v130_v14 = vpack.c.bf16 %v125_v13, %v124_v12  ;;  %v131_v17 = vpack.c.bf16 %v127_v16, %v126_v15  ;;  %v200_v18 = vld [vmem:[%s425_s2] ss:$0 sm:$0xff]  ;;  %s303_s2 = scalar_lea.vmem %s191_s8, 128 }
  0x3b   :  { %219 = vmatprep.subr.bf16.mxu1 %v336_v0  ;;  %v202_v26 = vld [vmem:[%s427_s4] ss:$0 sm:$0xff]  ;;  %p304_p10 = scmp.ne.s32.totalorder %s191_s8, %s303_s2  ;;  %p309_p12 = scmp.lt.s32.totalorder %s303_s2, %s303_s2 }
  0x3d   :  { %214 = vmatmul.mubr.msk.bf16.vlgmr.msra.gmra.mrb[0].mxu0 %vm70_vm2, %v60_v10  ;;  %p310_p13 = por %p309_p12, %p308_p11 }
  0x3e   :  { %220 = vmatpush3.bf16.msra.mxu1 %v129_v11 }
  0x3f   :  { %221 = vmatprep.subr.bf16.mxu1 %v336_v0  ;;  %p311_p0 = pnand %p310_p13, %p304_p10 }
  0x42   :  { %222 = vmatpush3.bf16.msra.mxu1 %v130_v14 }
  0x43   :  { %223 = vmatprep.subr.bf16.mxu1 %v336_v0 }
  0x46   :  { %224 = vmatpush3.bf16.msra.mxu1 %v131_v17 }
 0x110   :  { %v112_v19 = vpop.f32.mrb[0].mxu0 }
 0x111   :  { %v113_v20 = vadd.f32 %v200_v18, %v112_v19  ;;  %v215_v21 = vpop.f32.mrb[1].mxu0 }
 0x112   :  { %v115_v22 = vpop.f32.mrb[2].mxu0 }
 0x113   :  { %v118_v23 = vmax.f32 %v113_v20, 0.0  ;;  %v216_v24 = vpop.f32.mrb[3].mxu0 }
 0x115   :  { %v119_v25 = vpack.c.bf16 %v118_v23, %v118_v23 }
 0x117   :  { %226 = vmatmul.mubr.msk.bf16.vlgmr.msra.gmra.mrb[0].mxu1 %vm139_vm3, %v119_v25 }
 0x1ea   :  { %v177_v27 = vpop.f32.mrb[0].mxu1 }
 0x1eb   :  { %v178_v28 = vadd.f32 %v202_v26, %v177_v27  ;;  %v227_v29 = vpop.f32.mrb[1].mxu1 }
 0x1ec   :  { %v180_v30 = vpop.f32.mrb[2].mxu1 }
 0x1ed   :  { %183 = vst [vmem:[#allocation8] sm:$0xff] %v178_v28  ;;  %v228_v31 = vpop.f32.mrb[3].mxu1 }
 0x1ee   :  { %314 = shalt.err (!%p311_p0)
}
 0x1ef   :  { %s315_s4 = scalar_lea.hbm %s428_s5, 128 }
 0x1f0   :  { %p316_p1 = scmp.ne.s32.totalorder %s428_s5, %s315_s4  ;;  %p319_p2 = scmp.lt.u32.totalorder %s315_s4, %s428_s5 }
 0x1f2   :  { %p321_p3 = pnand %p319_p2, %p316_p1 }
 0x1f4   :  { %324 = shalt.err (!%p321_p3)
}
 0x1f5   :  { %193 = dma.vmem_to_hbm [thread:$0]  %s191_s8, 128, %s428_s5, [#allocation4]  }
 0x1f6   :  { %329 = dma.done.wait [#allocation4], 128  }
 0x1f7   :  { %330 = vsyncadd [#allocation4], 4294967168 }
 0x1f8   :  { %197 = vsyncpa [#allocation3], 1 }
 0x1f9   :  { %198 = vsyncpa [#allocation6], 1 }
 0x1fa   :  { %199 = vsyncpa [#allocation4], 1 }

</bundles_post_ra>
